<compile_context>
chip_gen: v7x
topology: tpu7x:2x2x1
jax: 0.10.0
libtpu: 0.0.40
codegen_flags: <defaults>
</compile_context>

<pallas_src>
import jax
import jax.numpy as jnp
from jax.experimental import pallas as pl
from jax.experimental.pallas import tpu as pltpu


# ---------------------------------------------------------------------------
# Kernel 1: tiny affine-parameter kernel (off the hot path, runs once).
#   scale = 1 + film @ wg + bg        (B, C)
#   beta  =     film @ wb + bb        (B, C)
# ---------------------------------------------------------------------------
def film_affine_kernel(film_ref, wg_ref, bg_ref, wb_ref, bb_ref,
                       scale_ref, beta_ref):
    film = film_ref[...]
    gamma = jnp.dot(film, wg_ref[...], preferred_element_type=jnp.float32) + bg_ref[...]
    beta = jnp.dot(film, wb_ref[...], preferred_element_type=jnp.float32) + bb_ref[...]
    scale_ref[...] = (1.0 + gamma).astype(scale_ref.dtype)
    beta_ref[...] = beta.astype(beta_ref.dtype)


# ---------------------------------------------------------------------------
# Kernel 2: tiled, sublane/lane-dense elementwise FiLM modulation.
#   out[r, l] = scale[r] * x[r, l] + beta[r],  r = b*C + c,  l = h*W + w
# ---------------------------------------------------------------------------
def film_modulate_kernel(scale_ref, beta_ref, x_ref, o_ref):
    o_ref[...] = (scale_ref[...] * x_ref[...] + beta_ref[...]).astype(o_ref.dtype)


def _pick_block(dim, target, align):
    """Largest block <= target that is either the full dim or an align-multiple."""
    if dim <= target:
        return dim
    return max(align, (target // align) * align)


def film_block(x, film_input, wg, bg, wb, bb):
    """FiLMBlock forward.

    x:          (B, C, H, W) float32 (NCHW, like PyTorch)
    film_input: (B, E) float32
    wg, wb:     (E, C)  -- Linear weight already transposed (weight.T)
    bg, bb:     (C,)
    Returns (B, C, H, W).
    """
    B, C, H, W = x.shape
    E = film_input.shape[1]
    BC, HW = B * C, H * W

    # --- Step 1: per-(batch, channel) scale / beta (tiny matmul, one call) ---
    scale, beta = pl.pallas_call(
        film_affine_kernel,
        out_shape=(jax.ShapeDtypeStruct((B, C), jnp.float32),
                   jax.ShapeDtypeStruct((B, C), jnp.float32)),
        grid_spec=pltpu.PrefetchScalarGridSpec(
            num_scalar_prefetch=0,
            grid=(1,),
            in_specs=[
                pl.BlockSpec((B, E), lambda i: (0, 0)),
                pl.BlockSpec((E, C), lambda i: (0, 0)),
                pl.BlockSpec((1, C), lambda i: (0, 0)),
                pl.BlockSpec((E, C), lambda i: (0, 0)),
                pl.BlockSpec((1, C), lambda i: (0, 0)),
            ],
            out_specs=[
                pl.BlockSpec((B, C), lambda i: (0, 0)),
                pl.BlockSpec((B, C), lambda i: (0, 0)),
            ],
        ),
        compiler_params=pltpu.CompilerParams(
            dimension_semantics=("arbitrary",)),
    )(film_input, wg, bg.reshape(1, C), wb, bb.reshape(1, C))

    scale2 = scale.reshape(BC, 1)
    beta2 = beta.reshape(BC, 1)

    # --- Step 2: sublane/lane-dense elementwise pass over (B*C, H*W) ---------
    x2 = x.reshape(BC, HW)

    br = _pick_block(BC, 256, 8)      # sublane tile (rows = batch*channel)
    bl = _pick_block(HW, 2048, 128)   # lane tile (spatial)
    grid = (pl.cdiv(BC, br), pl.cdiv(HW, bl))

    out2 = pl.pallas_call(
        film_modulate_kernel,
        out_shape=jax.ShapeDtypeStruct((BC, HW), x.dtype),
        grid_spec=pltpu.PrefetchScalarGridSpec(
            num_scalar_prefetch=0,
            grid=grid,
            in_specs=[
                pl.BlockSpec((br, 1), lambda i, j: (i, 0)),
                pl.BlockSpec((br, 1), lambda i, j: (i, 0)),
                pl.BlockSpec((br, bl), lambda i, j: (i, j)),
            ],
            out_specs=pl.BlockSpec((br, bl), lambda i, j: (i, j)),
        ),
        compiler_params=pltpu.CompilerParams(
            dimension_semantics=("parallel", "parallel")),
    )(scale2, beta2, x2)

    return out2.reshape(B, C, H, W)


if __name__ == "__main__":
    # Small shapes implied by the forward: x NCHW, film_input (B, emb_dim)
    B, C, H, W = 2, 4, 16, 16
    E = 8  # emb_dim

    key = jax.random.PRNGKey(0)
    kx, kf, kwg, kbg, kwb, kbb = jax.random.split(key, 6)

    x = jax.random.normal(kx, (B, C, H, W), dtype=jnp.float32)
    film_input = jax.random.normal(kf, (B, E), dtype=jnp.float32)

    # Deterministic parameter init mimicking rlkit Mlp(last_fc) with init_w=0.001:
    # uniform(-init_w, init_w) for the final layer weights and biases.
    init_w = 0.001
    wg = jax.random.uniform(kwg, (E, C), minval=-init_w, maxval=init_w, dtype=jnp.float32)
    bg = jax.random.uniform(kbg, (C,), minval=-init_w, maxval=init_w, dtype=jnp.float32)
    wb = jax.random.uniform(kwb, (E, C), minval=-init_w, maxval=init_w, dtype=jnp.float32)
    bb = jax.random.uniform(kbb, (C,), minval=-init_w, maxval=init_w, dtype=jnp.float32)

    out = film_block(x, film_input, wg, bg, wb, bb)
    out = jax.block_until_ready(out)

    # Pure-JAX reference for sanity checking.
    gamma_ref = film_input @ wg + bg
    beta_ref = film_input @ wb + bb
    ref = (1.0 + gamma_ref)[:, :, None, None] * x + beta_ref[:, :, None, None]
    assert out.shape == (B, C, H, W)
    assert jnp.allclose(out, ref, atol=1e-5, rtol=1e-5)

    print("KERNEL_OK")
</pallas_src>

<mosaic_0001>
module attributes {stable_mosaic.version = 11 : i64} {
  func.func @film_affine_kernel(%arg0: i32, %arg1: memref<2x8xf32, #tpu.memory_space<vmem>>, %arg2: memref<8x4xf32, #tpu.memory_space<vmem>>, %arg3: memref<1x4xf32, #tpu.memory_space<vmem>>, %arg4: memref<8x4xf32, #tpu.memory_space<vmem>>, %arg5: memref<1x4xf32, #tpu.memory_space<vmem>>, %arg6: memref<2x4xf32, #tpu.memory_space<vmem>>, %arg7: memref<2x4xf32, #tpu.memory_space<vmem>>) attributes {dimension_semantics = [#tpu.dimension_semantics<arbitrary>], iteration_bounds = array<i64: 1>, scalar_prefetch = 0 : i64, scratch_operands = 0 : i64, tpu.core_type = #tpu.core_type<tc>, window_params = [{pipeline_mode = #tpu.pipeline_mode<synchronous>, transform_indices = @transform_0, window_bounds = array<i64: 2, 8>}, {pipeline_mode = #tpu.pipeline_mode<synchronous>, transform_indices = @transform_1, window_bounds = array<i64: 8, 4>}, {pipeline_mode = #tpu.pipeline_mode<synchronous>, transform_indices = @transform_2, window_bounds = array<i64: 1, 4>}, {pipeline_mode = #tpu.pipeline_mode<synchronous>, transform_indices = @transform_3, window_bounds = array<i64: 8, 4>}, {pipeline_mode = #tpu.pipeline_mode<synchronous>, transform_indices = @transform_4, window_bounds = array<i64: 1, 4>}, {pipeline_mode = #tpu.pipeline_mode<synchronous>, transform_indices = @transform_5, window_bounds = array<i64: 2, 4>}, {pipeline_mode = #tpu.pipeline_mode<synchronous>, transform_indices = @transform_6, window_bounds = array<i64: 2, 4>}]} {
    %c0 = arith.constant 0 : index
    %c0_0 = arith.constant 0 : index
    %0 = vector.load %arg1[%c0, %c0_0] : memref<2x8xf32, #tpu.memory_space<vmem>>, vector<2x8xf32>
    %c0_1 = arith.constant 0 : index
    %c0_2 = arith.constant 0 : index
    %1 = vector.load %arg2[%c0_1, %c0_2] : memref<8x4xf32, #tpu.memory_space<vmem>>, vector<8x4xf32>
    %cst = arith.constant dense<0.000000e+00> : vector<2x4xf32>
    %2 = tpu.matmul %0, %1, %cst {dimension_numbers = #tpu.dot_dimension_numbers<[1], [0], [0], [1], [0, 0, 1, 1], [], []>} : vector<2x8xf32>, vector<8x4xf32>, vector<2x4xf32> -> vector<2x4xf32>
    %c0_3 = arith.constant 0 : index
    %c0_4 = arith.constant 0 : index
    %3 = vector.load %arg3[%c0_3, %c0_4] : memref<1x4xf32, #tpu.memory_space<vmem>>, vector<1x4xf32>
    %4 = vector.broadcast %3 : vector<1x4xf32> to vector<2x4xf32>
    %5 = arith.addf %2, %4 : vector<2x4xf32>
    %c0_5 = arith.constant 0 : index
    %c0_6 = arith.constant 0 : index
    %6 = vector.load %arg4[%c0_5, %c0_6] : memref<8x4xf32, #tpu.memory_space<vmem>>, vector<8x4xf32>
    %cst_7 = arith.constant dense<0.000000e+00> : vector<2x4xf32>
    %7 = tpu.matmul %0, %6, %cst_7 {dimension_numbers = #tpu.dot_dimension_numbers<[1], [0], [0], [1], [0, 0, 1, 1], [], []>} : vector<2x8xf32>, vector<8x4xf32>, vector<2x4xf32> -> vector<2x4xf32>
    %c0_8 = arith.constant 0 : index
    %c0_9 = arith.constant 0 : index
    %8 = vector.load %arg5[%c0_8, %c0_9] : memref<1x4xf32, #tpu.memory_space<vmem>>, vector<1x4xf32>
    %9 = vector.broadcast %8 : vector<1x4xf32> to vector<2x4xf32>
    %10 = arith.addf %7, %9 : vector<2x4xf32>
    %cst_10 = arith.constant 1.000000e+00 : f32
    %11 = vector.broadcast %cst_10 : f32 to vector<2x4xf32>
    %12 = arith.addf %11, %5 : vector<2x4xf32>
    %c0_11 = arith.constant 0 : index
    %c0_12 = arith.constant 0 : index
    %13 = vector.load %arg6[%c0_11, %c0_12] : memref<2x4xf32, #tpu.memory_space<vmem>>, vector<2x4xf32>
    tpu.vector_store %arg6[%c0_11, %c0_12], %12 {strides = array<i32>} : memref<2x4xf32, #tpu.memory_space<vmem>>, vector<2x4xf32>,
    %c0_13 = arith.constant 0 : index
    %c0_14 = arith.constant 0 : index
    %14 = vector.load %arg7[%c0_13, %c0_14] : memref<2x4xf32, #tpu.memory_space<vmem>>, vector<2x4xf32>
    tpu.vector_store %arg7[%c0_13, %c0_14], %10 {strides = array<i32>} : memref<2x4xf32, #tpu.memory_space<vmem>>, vector<2x4xf32>,
    return
  }
  func.func @transform_0(%arg0: i32) -> (i32, i32) {
    %c0_i32 = arith.constant 0 : i32
    %c0_i32_0 = arith.constant 0 : i32
    %c0_i32_1 = arith.constant 0 : i32
    return %c0_i32, %c0_i32_0 : i32, i32
  }
  func.func @transform_1(%arg0: i32) -> (i32, i32) {
    %c0_i32 = arith.constant 0 : i32
    %c0_i32_0 = arith.constant 0 : i32
    %c0_i32_1 = arith.constant 0 : i32
    return %c0_i32, %c0_i32_0 : i32, i32
  }
  func.func @transform_2(%arg0: i32) -> (i32, i32) {
    %c0_i32 = arith.constant 0 : i32
    %c0_i32_0 = arith.constant 0 : i32
    %c0_i32_1 = arith.constant 0 : i32
    return %c0_i32, %c0_i32_0 : i32, i32
  }
  func.func @transform_3(%arg0: i32) -> (i32, i32) {
    %c0_i32 = arith.constant 0 : i32
    %c0_i32_0 = arith.constant 0 : i32
    %c0_i32_1 = arith.constant 0 : i32
    return %c0_i32, %c0_i32_0 : i32, i32
  }
  func.func @transform_4(%arg0: i32) -> (i32, i32) {
    %c0_i32 = arith.constant 0 : i32
    %c0_i32_0 = arith.constant 0 : i32
    %c0_i32_1 = arith.constant 0 : i32
    return %c0_i32, %c0_i32_0 : i32, i32
  }
  func.func @transform_5(%arg0: i32) -> (i32, i32) {
    %c0_i32 = arith.constant 0 : i32
    %c0_i32_0 = arith.constant 0 : i32
    %c0_i32_1 = arith.constant 0 : i32
    return %c0_i32, %c0_i32_0 : i32, i32
  }
  func.func @transform_6(%arg0: i32) -> (i32, i32) {
    %c0_i32 = arith.constant 0 : i32
    %c0_i32_0 = arith.constant 0 : i32
    %c0_i32_1 = arith.constant 0 : i32
    return %c0_i32, %c0_i32_0 : i32, i32
  }
}

</mosaic_0001>

<bundles_post_ra>
// kernel: tpu_custom_call.1
= control target key start
LH: loop header
LB: loop body
LE: loop exit
PB: predicated region body
PF: predicated region fallthrough
CT: control target
= control target key end

     0   :  { %12 = vsyncpa [#allocation3], 0  ;;  %vm33_vm0 = vcmask 64512   ;;  %v287_v2 = vmov 0.0   ;;  %vm288_vm1 = vmmov 0   ;;  %s365_s0 = inlined_call_operand.vmem [shape: f32[2,8], index: 0, kind: input, shape index: {}]   ;;  %s366_s1 = inlined_call_operand.vmem [shape: f32[8,4], index: 1, kind: input, shape index: {}]   ;;  %s367_s2 = inlined_call_operand.vmem [shape: f32[1,4], index: 2, kind: input, shape index: {}]   ;;  %s368_s3 = inlined_call_operand.vmem [shape: f32[8,4], index: 3, kind: input, shape index: {}]   ;;  %s369_s4 = inlined_call_operand.vmem [shape: f32[1,4], index: 4, kind: input, shape index: {}]   ;;  %s370_s5 = inlined_call_operand.hbm [shape: f32[2,4], index: 5, kind: output, shape index: {0}]   ;;  %s371_s6 = inlined_call_operand.hbm [shape: f32[2,4], index: 6, kind: output, shape index: {1}]  }
   0x1   :  { %v25_v0 = vld [vmem:[%s366_s1] sm:$0xff]  ;;  %225 = vmatprep.subr.mxu0 %v287_v2  ;;  %227 = vmatprep.mubr.msk.f32.mxu0 %vm288_vm1, %v287_v2 }
   0x2   :  { %v24_v1 = vld [vmem:[%s365_s0] sm:$0x3] }
   0x3   :  { %v107_v3 = vld [vmem:[%s368_s3] sm:$0xff] }
   0x4   :  { %13 = vsyncpa [#allocation5], 0  ;;  %226 = vmatpush3.msra.mxu0 %v25_v0  ;;  %230 = vmatprep.subr.mxu1 %v287_v2  ;;  %v217_v4 = vld [vmem:[%s367_s2] ss:$0 sm:$0xff]  ;;  %s289_s29 = smov [#allocation2]   ;;  %s290_s3 = smov [#allocation4]  }
   0x5   :  { %228 = vmatmul.mubr.msk.f32.vlgmr.msra.gmra.mrb[0].mxu0 %vm33_vm0, %v24_v1  ;;  %231 = vmatpush3.msra.mxu1 %v107_v3  ;;  %v219_v6 = vld [vmem:[%s369_s4] ss:$0 sm:$0xff]  ;;  %s195_s30 = sshll.u32 %s289_s29, 4  ;;  %s205_s7 = sshll.u32 %s290_s3, 4  ;;  %vm186_vm2 = vcmask 25600   ;;  %s196_s30 = int_to_ptr.vmem [resolvable:$true] %s195_s30  ;;  %s206_s7 = int_to_ptr.vmem [resolvable:$true] %s205_s7 }
   0x6   :  { %232 = vmatprep.mubr.msk.f32.mxu1 %vm288_vm1, %v287_v2  ;;  %s239_s2 = scalar_lea.vmem %s196_s30, 32  ;;  %p244_p1 = scmp.lt.s32.totalorder %s196_s30, %s196_s30 }
   0x7   :  { %233 = vmatmul.mubr.msk.f32.vlgmr.msra.gmra.mrb[0].mxu1 %vm33_vm0, %v24_v1  ;;  %p240_p0 = scmp.ne.s32.totalorder %s196_s30, %s239_s2  ;;  %p245_p2 = scmp.lt.s32.totalorder %s239_s2, %s239_s2 }
   0x9   :  { %p246_p3 = por %p245_p2, %p244_p1 }
   0xb   :  { %p247_p4 = pnand %p246_p3, %p240_p0 }
  0xd8   :  { %v103_v5 = vpop.f32.mrb[0].mxu0 }
  0xd9   :  { %v104_v7 = vadd.f32 %v217_v4, %v103_v5  ;;  %v229_v8 = vpop.f32.mrb[1].mxu0 }
  0xda   :  { %v181_v9 = vpop.f32.mrb[0].mxu1 }
  0xdb   :  { %v185_v10 = vadd.f32 1.0, %v104_v7  ;;  %v182_v11 = vadd.f32 %v219_v6, %v181_v9  ;;  %v234_v12 = vpop.f32.mrb[1].mxu1 }
  0xdd   :  { %187 = vst.msk [vmem:[#allocation2] sm:$0x3] %vm186_vm2, %v185_v10  ;;  %188 = vst.msk [vmem:[#allocation4] sm:$0x3] %vm186_vm2, %v182_v11 }
  0xde   :  { %250 = shalt.err (!%p247_p4)
}
  0xdf   :  { %s251_s9 = scalar_lea.hbm %s370_s5, 32 }
  0xe0   :  { %p252_p5 = scmp.ne.s32.totalorder %s370_s5, %s251_s9  ;;  %p255_p6 = scmp.lt.u32.totalorder %s251_s9, %s370_s5 }
  0xe2   :  { %p257_p7 = pnand %p255_p6, %p252_p5 }
  0xe4   :  { %260 = shalt.err (!%p257_p7)
}
  0xe5   :  { %198 = dma.vmem_to_hbm [thread:$0]  %s196_s30, 32, %s370_s5, [#allocation3]  }
  0xe6   :  { %s261_s16 = scalar_lea.vmem %s206_s7, 32  ;;  %p266_p9 = scmp.lt.s32.totalorder %s206_s7, %s206_s7 }
  0xe7   :  { %p262_p8 = scmp.ne.s32.totalorder %s206_s7, %s261_s16  ;;  %p267_p10 = scmp.lt.s32.totalorder %s261_s16, %s261_s16 }
  0xe9   :  { %p268_p11 = por %p267_p10, %p266_p9 }
  0xeb   :  { %p269_p12 = pnand %p268_p11, %p262_p8 }
  0xed   :  { %272 = shalt.err (!%p269_p12)
}
  0xee   :  { %s273_s19 = scalar_lea.hbm %s371_s6, 32 }
  0xef   :  { %p274_p13 = scmp.ne.s32.totalorder %s371_s6, %s273_s19  ;;  %p277_p0 = scmp.lt.u32.totalorder %s273_s19, %s371_s6 }
  0xf1   :  { %p279_p1 = pnand %p277_p0, %p274_p13 }
  0xf3   :  { %282 = shalt.err (!%p279_p1)
}
  0xf4   :  { %208 = dma.vmem_to_hbm [thread:$0]  %s206_s7, 32, %s371_s6, [#allocation5]  }
  0xf5   :  { %283 = dma.done.wait [#allocation3], 32  }
  0xf6   :  { %284 = vsyncadd [#allocation3], 4294967264 }
  0xf7   :  { %285 = dma.done.wait [#allocation5], 32  }
  0xf8   :  { %286 = vsyncadd [#allocation5], 4294967264 }
  0xf9   :  { %215 = vsyncpa [#allocation3], 1 }
  0xfa   :  { %216 = vsyncpa [#allocation5], 1 }

</bundles_post_ra>
